<compile_context>
chip_gen: v7x
topology: tpu7x:2x2x1
jax: 0.10.0
libtpu: 0.0.40
codegen_flags: <defaults>
</compile_context>

<pallas_src>
import jax
import jax.numpy as jnp
from jax.experimental import pallas as pl
from jax.experimental.pallas import tpu as pltpu


def _round_up(x, m):
    return ((x + m - 1) // m) * m


def _vmem_capacity_bytes():
    try:
        info = pltpu.get_tpu_info()
        cap = getattr(info, "vmem_capacity_bytes", None)
        if cap:
            return int(cap)
    except Exception:
        pass
    return 64 * 1024 * 1024  # conservative default (v7x per-TensorCore)


def _select_tile(E, H, O, z_itemsize, return_emb, budget_bytes):
    """Largest 8-aligned edge tile fitting a conservative VMEM budget."""
    budget = int(budget_bytes * 0.75)
    # Weights/biases are auto-pipelined inputs -> double-buffered allocation.
    fixed = 2 * (H * H + H + H * O + O) * 4
    per_row = 2 * H * z_itemsize            # xi/xj gather scratch (one slot)
    per_row += 2 * O * 4                    # preds output (double-buffered)
    if return_emb:
        per_row += 2 * H * 4                # emb output (double-buffered)
    avail = max(budget - fixed, per_row * 8)
    tile = max(8, min(avail // per_row, 1024))
    tile = (tile // 8) * 8
    e8 = _round_up(max(E, 1), 8)
    if tile >= e8:
        # Whole problem fits one tile; split in two when big enough so both
        # v7x TensorCores get a grid step (edge axis is "parallel").
        tile = _round_up((e8 + 1) // 2, 8) if e8 >= 256 else e8
    return int(tile)


def _make_kernel(tile, with_emb, reduce_out):
    """Fused row-gather + Hadamard + 2-layer MLP kernel body."""

    def kernel(row_ref, col_ref,                 # scalar prefetch (SMEM) [E_pad]
               z1_hbm, z2_hbm,                   # node tables (memory_space=ANY)
               w1_ref, b1_ref, w2_ref, b2_ref,   # resident weights (VMEM)
               *outs_and_scratch):
        if with_emb:
            emb_ref, pred_ref, xi_buf, xj_buf, sem = outs_and_scratch
        else:
            pred_ref, xi_buf, xj_buf, sem = outs_and_scratch

        base = pl.program_id(0) * tile

        # ---- fused endpoint gather: one row DMA per edge, all in flight ----
        @pl.loop(0, tile)
        def _(e):
            r = row_ref[base + e]
            c = col_ref[base + e]
            pltpu.make_async_copy(z1_hbm.at[pl.ds(r, 1), :],
                                  xi_buf.at[pl.ds(e, 1), :], sem.at[0]).start()
            pltpu.make_async_copy(z2_hbm.at[pl.ds(c, 1), :],
                                  xj_buf.at[pl.ds(e, 1), :], sem.at[1]).start()

        @pl.loop(0, tile)
        def _(e):
            # Matched-size descriptors drain the shared DMA semaphores.
            pltpu.make_async_copy(z1_hbm.at[pl.ds(0, 1), :],
                                  xi_buf.at[pl.ds(e, 1), :], sem.at[0]).wait()
            pltpu.make_async_copy(z2_hbm.at[pl.ds(0, 1), :],
                                  xj_buf.at[pl.ds(e, 1), :], sem.at[1]).wait()

        # ---- edge head ------------------------------------------------------
        h = xi_buf[...] * xj_buf[...]                          # Hadamard (VPU)
        h = jnp.dot(h, w1_ref[...],
                    preferred_element_type=jnp.float32) + b1_ref[...]
        h = jnp.maximum(h, 0.0)
        if with_emb:
            emb_ref[...] = h.astype(emb_ref.dtype)
        if reduce_out:
            # out_channels == 1: skip the MXU; VPU multiply + lane reduce.
            p = jnp.sum(h * w2_ref[...], axis=-1, keepdims=True) + b2_ref[...]
        else:
            p = jnp.dot(h, w2_ref[...],
                        preferred_element_type=jnp.float32) + b2_ref[...]
        pred_ref[...] = p.astype(pred_ref.dtype)

    return kernel


def edge_predictor_pallas(z1, z2, row, col, params, *,
                          return_emb=True, tile_e=None):
    """Fused gather + EdgePredictor head.

    z1: [N1, H], z2: [N2, H] node embeddings (stay in HBM, gathered in-kernel).
    row, col: [E] endpoint indices.  Returns (emb [E, H] or None, preds [E, O]).
    """
    E = int(row.shape[0])
    _, H = z1.shape
    w1 = params["w1"]
    b1 = params["b1"].reshape(1, H)
    w2 = params["w2"]
    O = int(w2.shape[-1])

    reduce_out = (O == 1)
    if reduce_out:
        w2x = w2.reshape(1, H)                 # row vector, broadcast over tile
        b2x = params["b2"].reshape(1, 1)
    else:
        w2x = w2                               # [H, O]
        b2x = params["b2"].reshape(1, O)

    z_itemsize = jnp.dtype(z1.dtype).itemsize
    vmem_cap = _vmem_capacity_bytes()
    vmem_limit = int(min(vmem_cap * 3 // 4, 64 * 1024 * 1024))
    if tile_e is None:
        tile = _select_tile(E, H, O, z_itemsize, return_emb, vmem_limit)
    else:
        tile = max(8, (int(tile_e) // 8) * 8)

    E_pad = _round_up(max(E, 1), tile)
    row = row.astype(jnp.int32)
    col = col.astype(jnp.int32)
    if E_pad != E:
        # Only the tiny int32 index vectors get padded (pad -> node 0; the
        # garbage tail rows are sliced off below).  No [E, H] copies.
        row = jnp.pad(row, (0, E_pad - E))
        col = jnp.pad(col, (0, E_pad - E))
    grid = (E_pad // tile,)

    full = lambda i, row_ref, col_ref: (0, 0)
    in_specs = [
        pl.BlockSpec(memory_space=pl.ANY),       # z1: HBM, manual DMA gather
        pl.BlockSpec(memory_space=pl.ANY),       # z2: HBM, manual DMA gather
        pl.BlockSpec(w1.shape, full),            # W1  (resident in VMEM)
        pl.BlockSpec((1, H), full),              # b1
        pl.BlockSpec(w2x.shape, full),           # W2 (or W2 row for O == 1)
        pl.BlockSpec(b2x.shape, full),           # b2
    ]
    pred_spec = pl.BlockSpec((tile, O), lambda i, row_ref, col_ref: (i, 0))
    pred_shape = jax.ShapeDtypeStruct((E_pad, O), jnp.float32)
    scratch = [pltpu.VMEM((tile, H), z1.dtype),
               pltpu.VMEM((tile, H), z2.dtype),
               pltpu.SemaphoreType.DMA((2,))]
    cparams = pltpu.CompilerParams(
        dimension_semantics=("parallel",),       # edge tiles are independent
        vmem_limit_bytes=vmem_limit,
    )

    kernel = _make_kernel(tile, return_emb, reduce_out)

    if return_emb:
        out_shape = (jax.ShapeDtypeStruct((E_pad, H), jnp.float32), pred_shape)
        out_specs = (pl.BlockSpec((tile, H), lambda i, row_ref, col_ref: (i, 0)),
                     pred_spec)
    else:
        out_shape = pred_shape
        out_specs = pred_spec

    out = pl.pallas_call(
        kernel,
        out_shape=out_shape,
        grid_spec=pltpu.PrefetchScalarGridSpec(
            num_scalar_prefetch=2,
            grid=grid,
            in_specs=in_specs,
            out_specs=out_specs,
            scratch_shapes=scratch),
        compiler_params=cparams,
    )(row, col, z1, z2, w1, b1, w2x, b2x)

    if return_emb:
        emb_pad, preds_pad = out
        return emb_pad[:E], preds_pad[:E]
    return None, out[:E]


def lobby_edge_decoder_forward(z_dict, edge_label_index, params,
                               entity1="lobbyist", entity2="bill",
                               return_emb=False, tile_e=None):
    """JAX/Pallas equivalent of LobbyEdgeDecoder.forward (gather fused)."""
    row, col = edge_label_index[0], edge_label_index[1]
    emb, preds = edge_predictor_pallas(z_dict[entity1], z_dict[entity2],
                                       row, col, params,
                                       return_emb=return_emb, tile_e=tile_e)
    return (emb if return_emb else None), preds


def init_params(key, hidden_channels, out_channels):
    k1, k2 = jax.random.split(key)
    w1 = jax.random.normal(k1, (hidden_channels, hidden_channels), jnp.float32) * 0.1
    b1 = jnp.zeros((1, hidden_channels), jnp.float32)
    w2 = jax.random.normal(k2, (hidden_channels, out_channels), jnp.float32) * 0.1
    b2 = jnp.zeros((1, out_channels), jnp.float32)
    return {"w1": w1, "b1": b1, "w2": w2, "b2": b2}


def _reference(z_dict, edge_label_index, params, entity1, entity2):
    row, col = edge_label_index[0], edge_label_index[1]
    x_i = z_dict[entity1][row]
    x_j = z_dict[entity2][col]
    h = jnp.maximum((x_i * x_j) @ params["w1"] + params["b1"].reshape(1, -1), 0.0)
    p = h @ params["w2"] + params["b2"].reshape(1, -1)
    return h, p


if __name__ == "__main__":
    key = jax.random.PRNGKey(0)
    keys = jax.random.split(key, 8)

    num_nodes_1, num_nodes_2 = 16, 16
    hidden_channels, out_channels = 32, 1
    num_edges = 8

    z_dict = {
        "lobbyist": jax.random.normal(keys[0], (num_nodes_1, hidden_channels), jnp.float32),
        "bill":     jax.random.normal(keys[1], (num_nodes_2, hidden_channels), jnp.float32),
    }
    row_idx = jax.random.randint(keys[2], (num_edges,), 0, num_nodes_1, dtype=jnp.int32)
    col_idx = jax.random.randint(keys[3], (num_edges,), 0, num_nodes_2, dtype=jnp.int32)
    edge_label_index = jnp.stack([row_idx, col_idx], axis=0)

    params = init_params(keys[4], hidden_channels, out_channels)
    h_ref, p_ref = _reference(z_dict, edge_label_index, params, "lobbyist", "bill")

    # --- Case 1: return_emb=True (fused gather, O == 1 VPU output path) ---
    edge_emb, preds = lobby_edge_decoder_forward(
        z_dict, edge_label_index, params, return_emb=True)
    jax.block_until_ready(preds)
    jax.block_until_ready(edge_emb)
    assert edge_emb.shape == h_ref.shape and preds.shape == p_ref.shape
    assert jnp.allclose(edge_emb, h_ref, atol=1e-4), "edge_emb mismatch"
    assert jnp.allclose(preds, p_ref, atol=1e-4), "preds mismatch"

    # --- Case 2: return_emb=False (preds-only kernel, no [E, H] writeback) ---
    none_emb, preds2 = lobby_edge_decoder_forward(
        z_dict, edge_label_index, params, return_emb=False)
    jax.block_until_ready(preds2)
    assert none_emb is None
    assert jnp.allclose(preds2, p_ref, atol=1e-4), "preds (no-emb path) mismatch"

    # --- Case 3: ragged edge count, multi-tile grid with padded tail ---
    num_edges_big = 200
    row_b = jax.random.randint(keys[5], (num_edges_big,), 0, num_nodes_1, dtype=jnp.int32)
    col_b = jax.random.randint(keys[6], (num_edges_big,), 0, num_nodes_2, dtype=jnp.int32)
    eli_big = jnp.stack([row_b, col_b], axis=0)
    emb_b, preds_b = lobby_edge_decoder_forward(
        z_dict, eli_big, params, return_emb=True, tile_e=64)
    jax.block_until_ready(preds_b)
    h_ref_b, p_ref_b = _reference(z_dict, eli_big, params, "lobbyist", "bill")
    assert emb_b.shape == h_ref_b.shape and preds_b.shape == p_ref_b.shape
    assert jnp.allclose(emb_b, h_ref_b, atol=1e-4), "edge_emb mismatch (ragged)"
    assert jnp.allclose(preds_b, p_ref_b, atol=1e-4), "preds mismatch (ragged)"

    # --- Case 4: out_channels > 1 exercises the MXU second-layer path ---
    params4 = init_params(keys[7], hidden_channels, 4)
    emb4, preds4 = lobby_edge_decoder_forward(
        z_dict, edge_label_index, params4, return_emb=True)
    jax.block_until_ready(preds4)
    h_ref4, p_ref4 = _reference(z_dict, edge_label_index, params4, "lobbyist", "bill")
    assert jnp.allclose(emb4, h_ref4, atol=1e-4), "edge_emb mismatch (O=4)"
    assert jnp.allclose(preds4, p_ref4, atol=1e-4), "preds mismatch (O=4)"

    print("KERNEL_OK")
</pallas_src>

<mosaic_0001>
module attributes {stable_mosaic.version = 11 : i64} {
  func.func @kernel(%arg0: i32, %arg1: memref<8xi32, #tpu.memory_space<smem>>, %arg2: memref<8xi32, #tpu.memory_space<smem>>, %arg3: memref<16x32xf32, #tpu.memory_space<any>>, %arg4: memref<16x32xf32, #tpu.memory_space<any>>, %arg5: memref<32x32xf32, #tpu.memory_space<vmem>>, %arg6: memref<1x32xf32, #tpu.memory_space<vmem>>, %arg7: memref<1x32xf32, #tpu.memory_space<vmem>>, %arg8: memref<1x1xf32, #tpu.memory_space<vmem>>, %arg9: memref<8x32xf32, #tpu.memory_space<vmem>>, %arg10: memref<8x1xf32, #tpu.memory_space<vmem>>, %arg11: memref<8x32xf32, #tpu.memory_space<vmem>>, %arg12: memref<8x32xf32, #tpu.memory_space<vmem>>, %arg13: memref<2x!tpu.dma_semaphore, #tpu.memory_space<semaphore_mem>>) attributes {dimension_semantics = [#tpu.dimension_semantics<parallel>], iteration_bounds = array<i64: 1>, scalar_prefetch = 2 : i64, scratch_operands = 3 : i64, tpu.core_type = #tpu.core_type<tc>, window_params = [{}, {}, {pipeline_mode = #tpu.pipeline_mode<synchronous>, transform_indices = @transform_2, window_bounds = array<i64: 32, 32>}, {pipeline_mode = #tpu.pipeline_mode<synchronous>, transform_indices = @transform_3, window_bounds = array<i64: 1, 32>}, {pipeline_mode = #tpu.pipeline_mode<synchronous>, transform_indices = @transform_4, window_bounds = array<i64: 1, 32>}, {pipeline_mode = #tpu.pipeline_mode<synchronous>, transform_indices = @transform_5, window_bounds = array<i64: 1, 1>}, {transform_indices = @transform_6, window_bounds = array<i64: 8, 32>}, {transform_indices = @transform_7, window_bounds = array<i64: 8, 1>}]} {
    %c8_i32 = arith.constant 8 : i32
    %0 = arith.muli %arg0, %c8_i32 : i32
    %c0_i32 = arith.constant 0 : i32
    %c8_i32_0 = arith.constant 8 : i32
    %1 = arith.addi %c0_i32, %c8_i32_0 : i32
    %c1_i32 = arith.constant 1 : i32
    scf.for %arg14 = %c0_i32 to %1 step %c1_i32  : i32 {
      %c1_i32_23 = arith.constant 1 : i32
      %23 = arith.muli %arg14, %c1_i32_23 : i32
      %c0_i32_24 = arith.constant 0 : i32
      %24 = arith.addi %c0_i32_24, %23 : i32
      %25 = arith.addi %0, %24 : i32
      %26 = arith.index_cast %25 : i32 to index
      %27 = memref.load %arg1[%26] : memref<8xi32, #tpu.memory_space<smem>>
      %28 = arith.addi %0, %24 : i32
      %29 = arith.index_cast %28 : i32 to index
      %30 = memref.load %arg2[%29] : memref<8xi32, #tpu.memory_space<smem>>
      %c0_i32_25 = arith.constant 0 : i32
      %c0_i32_26 = arith.constant 0 : i32
      %31 = tpu.memref_slice %arg3[%27, %c0_i32_26] : memref<16x32xf32, #tpu.memory_space<any>> -> memref<1x32xf32, #tpu.memory_space<any>>
      %c0_i32_27 = arith.constant 0 : i32
      %32 = tpu.memref_slice %arg11[%24, %c0_i32_27] : memref<8x32xf32, #tpu.memory_space<vmem>> -> memref<1x32xf32, #tpu.memory_space<vmem>>
      %33 = tpu.memref_slice %arg13[%c0_i32_25] : memref<2x!tpu.dma_semaphore, #tpu.memory_space<semaphore_mem>> -> memref<1x!tpu.dma_semaphore, #tpu.memory_space<semaphore_mem>>
      %34 = tpu.memref_squeeze %33 : memref<1x!tpu.dma_semaphore, #tpu.memory_space<semaphore_mem>> -> memref<!tpu.dma_semaphore, #tpu.memory_space<semaphore_mem>>
      tpu.enqueue_dma source(%31 : memref<1x32xf32, #tpu.memory_space<any>>) target(%32 : memref<1x32xf32, #tpu.memory_space<vmem>>) target_semaphore(%34 : memref<!tpu.dma_semaphore, #tpu.memory_space<semaphore_mem>>)
      %c1_i32_28 = arith.constant 1 : i32
      %c0_i32_29 = arith.constant 0 : i32
      %35 = tpu.memref_slice %arg4[%30, %c0_i32_29] : memref<16x32xf32, #tpu.memory_space<any>> -> memref<1x32xf32, #tpu.memory_space<any>>
      %c0_i32_30 = arith.constant 0 : i32
      %36 = tpu.memref_slice %arg12[%24, %c0_i32_30] : memref<8x32xf32, #tpu.memory_space<vmem>> -> memref<1x32xf32, #tpu.memory_space<vmem>>
      %37 = tpu.memref_slice %arg13[%c1_i32_28] : memref<2x!tpu.dma_semaphore, #tpu.memory_space<semaphore_mem>> -> memref<1x!tpu.dma_semaphore, #tpu.memory_space<semaphore_mem>>
      %38 = tpu.memref_squeeze %37 : memref<1x!tpu.dma_semaphore, #tpu.memory_space<semaphore_mem>> -> memref<!tpu.dma_semaphore, #tpu.memory_space<semaphore_mem>>
      tpu.enqueue_dma source(%35 : memref<1x32xf32, #tpu.memory_space<any>>) target(%36 : memref<1x32xf32, #tpu.memory_space<vmem>>) target_semaphore(%38 : memref<!tpu.dma_semaphore, #tpu.memory_space<semaphore_mem>>)
    }
    %c8_i32_1 = arith.constant 8 : i32
    %c0_i32_2 = arith.constant 0 : i32
    %c8_i32_3 = arith.constant 8 : i32
    %2 = arith.addi %c0_i32_2, %c8_i32_3 : i32
    %c1_i32_4 = arith.constant 1 : i32
    scf.for %arg14 = %c0_i32_2 to %2 step %c1_i32_4  : i32 {
      %c1_i32_23 = arith.constant 1 : i32
      %23 = arith.muli %arg14, %c1_i32_23 : i32
      %c0_i32_24 = arith.constant 0 : i32
      %24 = arith.addi %c0_i32_24, %23 : i32
      %c0_i32_25 = arith.constant 0 : i32
      %c0_i32_26 = arith.constant 0 : i32
      %c0_i32_27 = arith.constant 0 : i32
      %25 = tpu.memref_slice %arg3[%c0_i32_26, %c0_i32_27] : memref<16x32xf32, #tpu.memory_space<any>> -> memref<1x32xf32, #tpu.memory_space<any>>
      %c0_i32_28 = arith.constant 0 : i32
      %26 = tpu.memref_slice %arg11[%24, %c0_i32_28] : memref<8x32xf32, #tpu.memory_space<vmem>> -> memref<1x32xf32, #tpu.memory_space<vmem>>
      %27 = tpu.memref_slice %arg13[%c0_i32_25] : memref<2x!tpu.dma_semaphore, #tpu.memory_space<semaphore_mem>> -> memref<1x!tpu.dma_semaphore, #tpu.memory_space<semaphore_mem>>
      %28 = tpu.memref_squeeze %27 : memref<1x!tpu.dma_semaphore, #tpu.memory_space<semaphore_mem>> -> memref<!tpu.dma_semaphore, #tpu.memory_space<semaphore_mem>>
      tpu.wait_dma2 semaphore(%28 : memref<!tpu.dma_semaphore, #tpu.memory_space<semaphore_mem>>) src(%25 : memref<1x32xf32, #tpu.memory_space<any>>) dst(%26 : memref<1x32xf32, #tpu.memory_space<vmem>>)
      %c1_i32_29 = arith.constant 1 : i32
      %c0_i32_30 = arith.constant 0 : i32
      %c0_i32_31 = arith.constant 0 : i32
      %29 = tpu.memref_slice %arg4[%c0_i32_30, %c0_i32_31] : memref<16x32xf32, #tpu.memory_space<any>> -> memref<1x32xf32, #tpu.memory_space<any>>
      %c0_i32_32 = arith.constant 0 : i32
      %30 = tpu.memref_slice %arg12[%24, %c0_i32_32] : memref<8x32xf32, #tpu.memory_space<vmem>> -> memref<1x32xf32, #tpu.memory_space<vmem>>
      %31 = tpu.memref_slice %arg13[%c1_i32_29] : memref<2x!tpu.dma_semaphore, #tpu.memory_space<semaphore_mem>> -> memref<1x!tpu.dma_semaphore, #tpu.memory_space<semaphore_mem>>
      %32 = tpu.memref_squeeze %31 : memref<1x!tpu.dma_semaphore, #tpu.memory_space<semaphore_mem>> -> memref<!tpu.dma_semaphore, #tpu.memory_space<semaphore_mem>>
      tpu.wait_dma2 semaphore(%32 : memref<!tpu.dma_semaphore, #tpu.memory_space<semaphore_mem>>) src(%29 : memref<1x32xf32, #tpu.memory_space<any>>) dst(%30 : memref<1x32xf32, #tpu.memory_space<vmem>>)
    }
    %c8_i32_5 = arith.constant 8 : i32
    %c0 = arith.constant 0 : index
    %c0_6 = arith.constant 0 : index
    %3 = vector.load %arg11[%c0, %c0_6] : memref<8x32xf32, #tpu.memory_space<vmem>>, vector<8x32xf32>
    %c0_7 = arith.constant 0 : index
    %c0_8 = arith.constant 0 : index
    %4 = vector.load %arg12[%c0_7, %c0_8] : memref<8x32xf32, #tpu.memory_space<vmem>>, vector<8x32xf32>
    %5 = arith.mulf %3, %4 : vector<8x32xf32>
    %c0_9 = arith.constant 0 : index
    %c0_10 = arith.constant 0 : index
    %6 = vector.load %arg5[%c0_9, %c0_10] : memref<32x32xf32, #tpu.memory_space<vmem>>, vector<32x32xf32>
    %cst = arith.constant dense<0.000000e+00> : vector<8x32xf32>
    %7 = tpu.matmul %5, %6, %cst {dimension_numbers = #tpu.dot_dimension_numbers<[1], [0], [0], [1], [0, 0, 1, 1], [], []>} : vector<8x32xf32>, vector<32x32xf32>, vector<8x32xf32> -> vector<8x32xf32>
    %c0_11 = arith.constant 0 : index
    %c0_12 = arith.constant 0 : index
    %8 = vector.load %arg6[%c0_11, %c0_12] : memref<1x32xf32, #tpu.memory_space<vmem>>, vector<1x32xf32>
    %9 = vector.broadcast %8 : vector<1x32xf32> to vector<8x32xf32>
    %10 = arith.addf %7, %9 : vector<8x32xf32>
    %cst_13 = arith.constant 0.000000e+00 : f32
    %11 = vector.broadcast %cst_13 : f32 to vector<8x32xf32>
    %12 = arith.maximumf %10, %11 : vector<8x32xf32>
    %c0_14 = arith.constant 0 : index
    %c0_15 = arith.constant 0 : index
    %13 = vector.load %arg9[%c0_14, %c0_15] : memref<8x32xf32, #tpu.memory_space<vmem>>, vector<8x32xf32>
    tpu.vector_store %arg9[%c0_14, %c0_15], %12 {strides = array<i32>} : memref<8x32xf32, #tpu.memory_space<vmem>>, vector<8x32xf32>,
    %c0_16 = arith.constant 0 : index
    %c0_17 = arith.constant 0 : index
    %14 = vector.load %arg7[%c0_16, %c0_17] : memref<1x32xf32, #tpu.memory_space<vmem>>, vector<1x32xf32>
    %15 = vector.broadcast %14 : vector<1x32xf32> to vector<8x32xf32>
    %16 = arith.mulf %12, %15 : vector<8x32xf32>
    %cst_18 = arith.constant dense<0.000000e+00> : vector<8xf32>
    %17 = vector.multi_reduction <add>, %16, %cst_18 [1] : vector<8x32xf32> to vector<8xf32>
    %18 = vector.shape_cast %17 : vector<8xf32> to vector<8x1xf32>
    %c0_19 = arith.constant 0 : index
    %c0_20 = arith.constant 0 : index
    %19 = vector.load %arg8[%c0_19, %c0_20] : memref<1x1xf32, #tpu.memory_space<vmem>>, vector<1x1xf32>
    %20 = vector.broadcast %19 : vector<1x1xf32> to vector<8x1xf32>
    %21 = arith.addf %18, %20 : vector<8x1xf32>
    %c0_21 = arith.constant 0 : index
    %c0_22 = arith.constant 0 : index
    %22 = vector.load %arg10[%c0_21, %c0_22] : memref<8x1xf32, #tpu.memory_space<vmem>>, vector<8x1xf32>
    tpu.vector_store %arg10[%c0_21, %c0_22], %21 {strides = array<i32>} : memref<8x1xf32, #tpu.memory_space<vmem>>, vector<8x1xf32>,
    return
  }
  func.func @transform_2(%arg0: i32, %arg1: memref<8xi32, #tpu.memory_space<smem>>, %arg2: memref<8xi32, #tpu.memory_space<smem>>) -> (i32, i32) {
    %c0_i32 = arith.constant 0 : i32
    %c0_i32_0 = arith.constant 0 : i32
    %c0_i32_1 = arith.constant 0 : i32
    return %c0_i32, %c0_i32_0 : i32, i32
  }
  func.func @transform_3(%arg0: i32, %arg1: memref<8xi32, #tpu.memory_space<smem>>, %arg2: memref<8xi32, #tpu.memory_space<smem>>) -> (i32, i32) {
    %c0_i32 = arith.constant 0 : i32
    %c0_i32_0 = arith.constant 0 : i32
    %c0_i32_1 = arith.constant 0 : i32
    return %c0_i32, %c0_i32_0 : i32, i32
  }
  func.func @transform_4(%arg0: i32, %arg1: memref<8xi32, #tpu.memory_space<smem>>, %arg2: memref<8xi32, #tpu.memory_space<smem>>) -> (i32, i32) {
    %c0_i32 = arith.constant 0 : i32
    %c0_i32_0 = arith.constant 0 : i32
    %c0_i32_1 = arith.constant 0 : i32
    return %c0_i32, %c0_i32_0 : i32, i32
  }
  func.func @transform_5(%arg0: i32, %arg1: memref<8xi32, #tpu.memory_space<smem>>, %arg2: memref<8xi32, #tpu.memory_space<smem>>) -> (i32, i32) {
    %c0_i32 = arith.constant 0 : i32
    %c0_i32_0 = arith.constant 0 : i32
    %c0_i32_1 = arith.constant 0 : i32
    return %c0_i32, %c0_i32_0 : i32, i32
  }
  func.func @transform_6(%arg0: i32, %arg1: memref<8xi32, #tpu.memory_space<smem>>, %arg2: memref<8xi32, #tpu.memory_space<smem>>) -> (i32, i32) {
    %c0_i32 = arith.constant 0 : i32
    %c0_i32_0 = arith.constant 0 : i32
    return %arg0, %c0_i32 : i32, i32
  }
  func.func @transform_7(%arg0: i32, %arg1: memref<8xi32, #tpu.memory_space<smem>>, %arg2: memref<8xi32, #tpu.memory_space<smem>>) -> (i32, i32) {
    %c0_i32 = arith.constant 0 : i32
    %c0_i32_0 = arith.constant 0 : i32
    return %arg0, %c0_i32 : i32, i32
  }
}

</mosaic_0001>

<bundles_post_ra>
// kernel: tpu_custom_call.1
= control target key start
LH: loop header
LB: loop body
LE: loop exit
PB: predicated region body
PF: predicated region fallthrough
CT: control target
= control target key end

     0   :  { %s599_s0 = inlined_call_operand.vmem [shape: s32[8], index: 0, kind: input, shape index: {}]   ;;  %s600_s2 = inlined_call_operand.hbm [shape: f32[16,32], index: 2, kind: input, shape index: {}]   ;;  %s601_s3 = inlined_call_operand.hbm [shape: f32[16,32], index: 3, kind: input, shape index: {}]   ;;  %s602_s4 = inlined_call_operand.hbm [shape: f32[32,32], index: 4, kind: input, shape index: {}]   ;;  %s603_s5 = inlined_call_operand.vmem [shape: f32[1,32], index: 5, kind: input, shape index: {}]   ;;  %s604_s6 = inlined_call_operand.vmem [shape: f32[1,32], index: 6, kind: input, shape index: {}]   ;;  %s605_s8 = inlined_call_operand.hbm [shape: f32[8,32], index: 8, kind: output, shape index: {0}]   ;;  %s606_s9 = inlined_call_operand.vmem [shape: f32[8,1], index: 9, kind: output, shape index: {1}]   ;;  %s607_s1 = inlined_call_operand.vmem [shape: s32[8], index: 1, kind: input, shape index: {}]   ;;  %s608_s7 = inlined_call_operand.<no memory space> [shape: f32[1,1], index: 7, kind: input, shape index: {}]  }
   0x1   :  { %s15_s11 = sshll.u32 %s599_s0, 4  ;;  %s19_s14 = sshll.u32 %s607_s1, 4  ;;  %v23_v0 = vstv %s608_s7  ;;  %s16_s11 = int_to_ptr.vmem [resolvable:$true] %s15_s11  ;;  %s20_s14 = int_to_ptr.vmem [resolvable:$true] %s19_s14 }
   0x2   :  { %24 = vst [vmem:[#allocation8] sm:$0x1] %v23_v0  ;;  %s315_s17 = scalar_lea.vmem %s16_s11, 16  ;;  %p320_p1 = scmp.lt.s32.totalorder %s16_s11, %s16_s11 }
   0x3   :  { %p316_p0 = scmp.ne.s32.totalorder %s16_s11, %s315_s17  ;;  %p321_p2 = scmp.lt.s32.totalorder %s315_s17, %s315_s17 }
   0x5   :  { %p322_p3 = por %p321_p2, %p320_p1 }
   0x7   :  { %p323_p4 = pnand %p322_p3, %p316_p0 }
   0x9   :  { %326 = shalt.err (!%p323_p4)  }
   0xa   :  { %s457_s18 = smov [#allocation6]   ;;  %s327_s0 = scalar_lea.vmem %s20_s14, 16 }
   0xb   :  { %18 = dma.vmem_to_smem %s16_s11, 16, %s457_s18, [#allocation5] }
   0xc   :  { %p328_p5 = scmp.ne.s32.totalorder %s20_s14, %s327_s0  ;;  %p332_p6 = scmp.lt.s32.totalorder %s20_s14, %s20_s14 }
   0xd   :  { %p333_p7 = scmp.lt.s32.totalorder %s327_s0, %s327_s0 }
   0xf   :  { %p334_p8 = por %p333_p7, %p332_p6 }
  0x11   :  { %p335_p9 = pnand %p334_p8, %p328_p5 }
  0x13   :  { %338 = shalt.err (!%p335_p9)  }
  0x14   :  { %s458_s1 = smov [#allocation7]  }
  0x15   :  { %22 = dma.vmem_to_smem %s20_s14, 16, %s458_s1, [#allocation5] }
  0x16   :  { %439 = dma.done.wait [#allocation5], 32 }
  0x17   :  { %440 = vsyncadd [#allocation5], 4294967264 }
  0x18   :  { %26 = sfence }
  0x19   :  { %27 = vsyncpa [#allocation10], 0 }
  0x1a   :  { %28 = vsyncpa [#allocation11], 0  ;;  %s459_s7 = smov [#allocation9]   ;;  %s339_s22 = scalar_lea.hbm %s602_s4, 512 }
  0x1b   :  { %s34_s19 = sshll.u32 %s459_s7, 4  ;;  %p340_p10 = scmp.ne.s32.totalorder %s602_s4, %s339_s22  ;;  %s35_s19 = int_to_ptr.vmem [resolvable:$true] %s34_s19 }
  0x1c   :  { %p343_p11 = scmp.lt.u32.totalorder %s339_s22, %s602_s4 }
  0x1e   :  { %p345_p12 = pnand %p343_p11, %p340_p10 }
  0x20   :  { %348 = shalt.err (!%p345_p12)
}
  0x21   :  { %s349_s27 = scalar_lea.vmem %s35_s19, 512  ;;  %p354_p0 = scmp.lt.s32.totalorder %s35_s19, %s35_s19 }
  0x22   :  { %p350_p13 = scmp.ne.s32.totalorder %s35_s19, %s349_s27  ;;  %p355_p1 = scmp.lt.s32.totalorder %s349_s27, %s349_s27 }
  0x24   :  { %p356_p2 = por %p355_p1, %p354_p0 }
  0x26   :  { %p357_p3 = pnand %p356_p2, %p350_p13 }
  0x28   :  { %360 = shalt.err (!%p357_p3)
}
  0x29   :  { %s460_s28 = smov 128   ;;  %s461_s29 = smov 8  }
  0x2a   :  { %40 = dma.hbm_to_vmem [thread:$0]  %s602_s4, 512, %s35_s19, [#allocation10], %s460_s28, %s460_s28, %s461_s29  }
  0x2b   :  { %441 = dma.done.wait [#allocation10], 512  }
  0x2c   :  { %442 = vsyncadd [#allocation10], 4294966784  ;;  %s539_s11 = smov 0  }
  0x2d LB: > { %s58_s12 = sld [smem:[#allocation6 + %s451_s11]]  ;;  %s62_s14 = scalar_lea.vmem [#allocation2], %s451_s11  ;;  %s451_s11 = sphi %s539_s11, %s56_s11  }
  0x2e   : > { %s546_s13 = sld [smem:[#allocation7 + %s451_s11]]  ;;  %s70_s15 = sshll.u32 %s62_s14, 4  ;;  %s71_s15 = int_to_ptr.vmem [resolvable:$true] %s70_s15 }
  0x2f   : > { %s76_s4 = scalar_lea.vmem [#allocation3], %s451_s11  ;;  %s363_s22 = scalar_lea.hbm %s600_s2, 256 }
  0x30   : > { %s85_s16 = sshll.u32 %s76_s4, 4  ;;  %s550_s16 = int_to_ptr.vmem [resolvable:$true] %s85_s16 }
  0x33   : > { %s260_s17 = sshll.u32 %s58_s12, 4 }
  0x34   : > { %s61_s1 = scalar_lea.hbm %s600_s2, %s260_s17  ;;  %s261_s7 = sshll.u32 %s546_s13, 4 }
  0x35   : > { %s361_s19 = scalar_lea.hbm %s61_s1, 16  ;;  %p364_p5 = scmp.lt.u32.totalorder %s61_s1, %s600_s2 }
  0x36   : > { %p362_p4 = scmp.ne.s32.totalorder %s61_s1, %s361_s19  ;;  %p365_p6 = scmp.lt.u32.totalorder %s363_s22, %s361_s19 }
  0x37   : > { %p367_p8 = scmp.lt.u32.totalorder %s361_s19, %s61_s1 }
  0x38   : > { %p366_p7 = por %p365_p6, %p364_p5 }
  0x3a   : > { %p368_p9 = por %p367_p8, %p366_p7 }
  0x3c   : > { %p369_p10 = pnand %p368_p9, %p362_p4 }
  0x3e   : > { %372 = shalt.err (!%p369_p10)  }
  0x3f   : > { %s373_s25 = scalar_lea.vmem %s71_s15, 16  ;;  %s462_s26 = smov [#allocation2]  }
  0x40   : > { %p374_p11 = scmp.ne.s32.totalorder %s71_s15, %s373_s25  ;;  %s375_s27 = sshll.u32 %s462_s26, 4  ;;  %s376_s27 = int_to_ptr.vmem [resolvable:$false] %s375_s27 }
  0x41   : > { %s377_s28 = scalar_lea.vmem %s376_s27, 128  ;;  %p378_p12 = scmp.lt.s32.totalorder %s71_s15, %s376_s27 }
  0x42   : > { %p379_p13 = scmp.lt.s32.totalorder %s377_s28, %s373_s25 }
  0x44   : > { %p380_p0 = por %p379_p13, %p378_p12 }
  0x46   : > { %p381_p1 = pnand %p380_p0, %p374_p11 }
  0x48   : > { %384 = shalt.err (!%p381_p1)  }
  0x49   : > { %73 = dma.hbm_to_vmem [thread:$0]  %s61_s1, 16, %s71_s15, [#allocation4] }
  0x4a   : > { %s75_s10 = scalar_lea.hbm %s601_s3, %s261_s7  ;;  %s387_s4 = scalar_lea.hbm %s601_s3, 256 }
  0x4b   : > { %s385_s12 = scalar_lea.hbm %s75_s10, 16  ;;  %p388_p3 = scmp.lt.u32.totalorder %s75_s10, %s601_s3 }
  0x4c   : > { %p386_p2 = scmp.ne.s32.totalorder %s75_s10, %s385_s12  ;;  %p389_p4 = scmp.lt.u32.totalorder %s387_s4, %s385_s12 }
  0x4d   : > { %p391_p6 = scmp.lt.u32.totalorder %s385_s12, %s75_s10 }
  0x4e   : > { %p390_p5 = por %p389_p4, %p388_p3 }
  0x50   : > { %p392_p7 = por %p391_p6, %p390_p5 }
  0x52   : > { %p393_p8 = pnand %p392_p7, %p386_p2 }
  0x54   : > { %396 = shalt.err (!%p393_p8)  }
  0x55   : > { %s397_s15 = scalar_lea.vmem %s550_s16, 16  ;;  %s463_s0 = smov [#allocation3]  }
  0x56   : > { %p398_p9 = scmp.ne.s32.totalorder %s550_s16, %s397_s15  ;;  %s399_s1 = sshll.u32 %s463_s0, 4  ;;  %s400_s1 = int_to_ptr.vmem [resolvable:$false] %s399_s1 }
  0x57   : > { %s401_s7 = scalar_lea.vmem %s400_s1, 128  ;;  %p402_p10 = scmp.lt.s32.totalorder %s550_s16, %s400_s1 }
  0x58   : > { %p403_p11 = scmp.lt.s32.totalorder %s401_s7, %s397_s15 }
  0x5a   : > { %p404_p12 = por %p403_p11, %p402_p10 }
  0x5c   : > { %p405_p13 = pnand %p404_p12, %p398_p9 }
  0x5e   : > { %408 = shalt.err (!%p405_p13)  }
  0x5f   : > { %88 = dma.hbm_to_vmem [thread:$0]  %s75_s10, 16, %s550_s16, [#allocation4 + $0x1] }
  0x60   : > { %s56_s11 = sadd.s32 1, %s451_s11  }
  0x61   : > { %p53_p0 = scmp.ge.s32.totalorder %s56_s11, 8  }
  0x62   :  { %s453_s19 = smov (%p53_p0), 0  }
  0x63   :  { %55 = sbr.rel (!%p53_p0) target bundleno = 45 (0x2d), region = 77 }
  0x6a LB: > { %443 = dma.done.wait [#allocation4], 16  ;;  %s455_s19 = sphi %s453_s19, %s94_s19  }
  0x6b   : > { %444 = vsyncadd [#allocation4], 4294967280 }
  0x6c   : > { %445 = dma.done.wait [#allocation4 + $0x1], 16 }
  0x6d   : > { %446 = vsyncadd [#allocation4 + $0x1], 4294967280  ;;  %s94_s19 = sadd.s32 1, %s455_s19  }
  0x6e   : > { %p91_p1 = scmp.ge.s32.totalorder %s94_s19, 8  }
  0x6f   :  { %v104_v1 = vld [vmem:[#allocation9] sm:$0xff] (%p91_p1)  ;;  %v105_v2 = vld [vmem:[#allocation9 + $0x8] sm:$0xff] (%p91_p1)  ;;  %v106_v3 = vld [vmem:[#allocation9 + $0x10] sm:$0xff] (%p91_p1)  ;;  %v464_v4 = vmov (%p91_p1), 0.0|0.0   ;;  %vm465_vm0 = vmmov (%p91_p1), 0   ;;  %v466_v7 = vmov (%p91_p1), 0.0  }
  0x70   :  { %93 = sbr.rel (!%p91_p1) target bundleno = 106 (0x6a), region = 88  ;;  %284 = vmatprep.subr.bf16.mxu0 (%p91_p1), %v464_v4  ;;  %v285_v5 = vpack.c.bf16 (%p91_p1), %v105_v2, %v104_v1  ;;  %v107_v6 = vld [vmem:[#allocation9 + $0x18] sm:$0xff] (%p91_p1)  ;;  %281 = vmatprep.mubr.msk.f32.mxu0 (%p91_p1), %vm465_vm0, %v466_v7  ;;  %v101_v9 = vld [vmem:[#allocation2] sm:$0xff] (%p91_p1)  ;;  %vm115_vm1 = vcmask (%p91_p1), 261120   ;;  %s467_s20 = smov (%p91_p1), [#allocation12]  }
  0x71   :  { %v288_v8 = vpack.c.bf16 (%p91_p1), %v107_v6, %v106_v3  ;;  %v102_v10 = vld [vmem:[#allocation3] sm:$0xff] (%p91_p1)  ;;  %v262_v12 = vld [vmem:[%s603_s5] ss:$0 sm:$0xff] (%p91_p1)  ;;  %s218_s21 = sshll.u32 (%p91_p1), %s467_s20, 4  ;;  %s219_s21 = int_to_ptr.vmem [resolvable:$true] %s218_s21 }
  0x72   :  { %286 = vmatpush3.bf16.msra.mxu0 (%p91_p1), %v285_v5  ;;  %v103_v11 = vmul.f32 (%p91_p1), %v102_v10, %v101_v9  ;;  %v264_v16 = vld [vmem:[%s604_s6] ss:$0 sm:$0xff] (%p91_p1)  ;;  %s409_s22 = scalar_lea.vmem (%p91_p1), %s219_s21, 128  ;;  %p414_p3 = scmp.lt.s32.totalorder (%p91_p1), %s219_s21, %s219_s21 }
  0x73   :  { %287 = vmatprep.subr.bf16.mxu0 (%p91_p1), %v464_v4  ;;  %p410_p2 = scmp.ne.s32.totalorder (%p91_p1), %s219_s21, %s409_s22  ;;  %p415_p4 = scmp.lt.s32.totalorder (%p91_p1), %s409_s22, %s409_s22 }
  0x75   :  { %p416_p5 = por (%p91_p1), %p415_p4, %p414_p3 }
  0x76   :  { %289 = vmatpush3.bf16.msra.mxu0 (%p91_p1), %v288_v8 }
  0x77   :  { %p417_p6 = pnand %p416_p5, %p410_p2 }
  0x79   :  { %282 = vmatmul.mubr.msk.f32.vlgmr.msra.gmra.mrb[0].mxu0 %vm115_vm1, %v103_v11 }
 0x14c   :  { %v185_v13 = vpop.f32.mrb[0].mxu0 }
 0x14d   :  { %v186_v14 = vadd.f32 %v262_v12, %v185_v13  ;;  %v283_v15 = vpop.f32.mrb[1].mxu0 }
 0x14f   :  { %v189_v17 = vmax.f32 %v186_v14, 0.0 }
 0x151   :  { %190 = vst.msk [vmem:[#allocation12] sm:$0xff] %vm115_vm1, %v189_v17  ;;  %v198_v18 = vmul.f32 %v264_v16, %v189_v17 }
 0x153   :  { %v199_v19 = vsel %vm115_vm1, %v198_v18, 0.0 }
 0x154   :  { %200 = vadd.xlane.f32.xlu0 %v199_v19 }
 0x155   :  { %420 = shalt.err (!%p417_p6)
}
 0x156   :  { %s421_s24 = scalar_lea.hbm %s605_s8, 128 }
 0x157   :  { %p422_p7 = scmp.ne.s32.totalorder %s605_s8, %s421_s24  ;;  %p425_p8 = scmp.lt.u32.totalorder %s421_s24, %s605_s8 }
 0x159   :  { %p427_p9 = pnand %p425_p8, %p422_p7 }
 0x15b   :  { %430 = shalt.err (!%p427_p9)
}
 0x15c   :  { %221 = dma.vmem_to_hbm [thread:$0]  %s219_s21, 128, %s605_s8, [#allocation11]   ;;  %v265_v20 = vld [vmem:[#allocation8] ss:$0 sm:$0xff]  ;;  %vm210_vm2 = vcmask 7168  }
 0x1e1   :  { %v201_v21 = vpop.xlane.xlu0 %200 }
 0x1e2   :  { %v209_v22 = vadd.f32 %v265_v20, %v201_v21 }
 0x1e4   :  { %211 = vst.msk [vmem:[%s606_s9] sm:$0xff] %vm210_vm2, %v209_v22 }
 0x1e5   :  { %447 = dma.done.wait [#allocation11], 128  }
 0x1e6   :  { %448 = vsyncadd [#allocation11], 4294967168 }
 0x1e7   :  { %229 = vsyncpa [#allocation10], 1 }
 0x1e8   :  { %230 = vsyncpa [#allocation11], 1 }
 0x1e9   :  { %231 = vsyncmov [#allocation4] }
 0x1ec   :  { %s232_s12 = vpop.sfrf %231 }
 0x1ed   :  { %p266_p10 = scmp.ne.s32.totalorder %s232_s12, 0 }
 0x1ef   :  { %236 = shalt.err (%p266_p10)  }
 0x1f0   :  { %238 = vsyncmov [#allocation4 + $0x1] }
 0x1f3   :  { %s239_s13 = vpop.sfrf %238 }
 0x1f4   :  { %p267_p11 = scmp.ne.s32.totalorder %s239_s13, 0 }
 0x1f6   :  { %243 = shalt.err (%p267_p11)  }

</bundles_post_ra>
